<compile_context>
chip_gen: v6e
topology: v6e:2x2x1
jax: 0.10.0
libtpu: 0.0.40
codegen_flags: <defaults>
</compile_context>

<pallas_src>
import math

import numpy as np
import jax
import jax.numpy as jnp
from jax import lax
from jax.experimental import pallas as pl
from jax.experimental.pallas import tpu as pltpu


# ---------------------------------------------------------------------------
# Host-side parameter construction
# ---------------------------------------------------------------------------
def _gaussian_1d(size, sigma):
    """Normalized 1-D Gaussian taps (the module's 2-D kernel is their outer product)."""
    mean = (size - 1) / 2.0
    w = np.exp(-(((np.arange(size, dtype=np.float64) - mean) / sigma) ** 2) / 2.0)
    return w / w.sum()


def _smoothing_matrix(n, taps):
    """n x n matrix of a 1-D correlation with `taps` under reflect padding.

    Row i holds the effective weights on the *unpadded* signal for output sample i,
    i.e. the Toeplitz band with the reflected boundary contributions folded into the
    first/last `pad` rows.
    """
    k = len(taps)
    pad = k // 2
    s = np.zeros((n, n), dtype=np.float64)
    for i in range(n):
        for j in range(k):
            src = i + j - pad
            if src < 0:
                src = -src
            elif src >= n:
                src = 2 * (n - 1) - src
            s[i, src] += taps[j]
    return s.astype(np.float32)


# ---------------------------------------------------------------------------
# Pallas kernel: one (TILE_B, H, W) block of channel images -> smoothed block
# ---------------------------------------------------------------------------
def _smooth_kernel(sh_ref, swt_ref, x_ref, o_ref):
    tb, h, w = x_ref.shape
    sh = sh_ref[...]       # (H, H) vertical-pass matrix, reflect boundary folded in
    swt = swt_ref[...]     # (W, W) horizontal-pass matrix, already transposed

    # Horizontal pass: one big MXU matmul over every row of the block.
    flat = x_ref[...].reshape(tb * h, w)
    t = jnp.dot(flat, swt, preferred_element_type=jnp.float32,
                precision=lax.Precision.HIGHEST).reshape(tb, h, w)

    # Vertical pass: one small left-matmul per channel image, unrolled (TILE_B is
    # capped), writing straight into the output block — no extra VMEM temporaries.
    for b in range(tb):
        o_ref[b] = jnp.dot(sh, t[b], preferred_element_type=jnp.float32,
                           precision=lax.Precision.HIGHEST).astype(o_ref.dtype)


# ---------------------------------------------------------------------------
# Tiling / VMEM sizing
# ---------------------------------------------------------------------------
def _vmem_budget():
    """Generation-aware VMEM limits (v7x: 64 MiB physical; v5e/v6e: 128 MiB)."""
    try:
        cap = int(pltpu.get_tpu_info().vmem_capacity_bytes)
    except Exception:
        cap = 64 * 1024 * 1024          # conservative fallback (v7x per-core VMEM)
    limit = min(int(cap * 0.75), 112 * 1024 * 1024)   # CompilerParams vmem_limit_bytes
    budget = min(int(cap * 0.30), 40 * 1024 * 1024)   # working-set budget for one block
    return limit, budget


def _pick_tile_b(nc, h, w, itemsize, budget, max_unroll=64):
    """Channel-image tile along the fused N*C axis.

    Counts double-buffered in/out blocks plus the f32 temporaries of both matmul
    passes; capped so the vertical-pass unroll stays small and so there are >= 2
    grid blocks whenever possible (dual-TensorCore v7x).  Always a divisor of nc,
    so no ragged padding / slicing HBM pass is ever needed.
    """
    per_img = h * w * (4 * itemsize + 8)
    cap = max(1, budget // per_img)
    cap = min(cap, max_unroll)
    if nc >= 2:
        cap = min(cap, max(1, nc // 2))
    best = 1
    for d in range(1, min(cap, nc) + 1):
        if nc % d == 0:
            best = d
    return best


# ---------------------------------------------------------------------------
# Wrapper
# ---------------------------------------------------------------------------
def gaussian_smoothing(x, kernel_size, sigma):
    """Forward pass of GaussianSmoothing (dim=2). x: (N, C, H, W) -> (N, C, H, W)."""
    if isinstance(kernel_size, (int, float)):
        kernel_size = [int(kernel_size)] * 2
    if isinstance(sigma, (int, float)):
        sigma = [float(sigma)] * 2
    kh, kw = int(kernel_size[0]), int(kernel_size[1])
    assert kh == kw and kh % 2 == 1, "odd, symmetric kernel_size expected"
    pad = kh // 2                                   # matches int(kernel_size[0] / 2)

    n, c, h, w = x.shape
    assert pad <= h - 1 and pad <= w - 1, "reflect padding needs pad <= spatial - 1"

    s_h = _smoothing_matrix(h, _gaussian_1d(kh, float(sigma[0])))        # taps along H
    s_w_t = _smoothing_matrix(w, _gaussian_1d(kw, float(sigma[1]))).T    # taps along W

    nc = n * c
    vmem_limit, budget = _vmem_budget()
    tile_b = _pick_tile_b(nc, h, w, x.dtype.itemsize, budget)

    xr = x.reshape(nc, h, w)                        # free reshape: no HBM layout pass

    # TODO(synk): very large spatial planes (beyond ~1k x 1k f32) would additionally
    # need H-tiling with a pad-row halo; blocks currently carry the full (H, W) plane.
    out = pl.pallas_call(
        _smooth_kernel,
        out_shape=jax.ShapeDtypeStruct((nc, h, w), x.dtype),
        grid=(nc // tile_b,),
        in_specs=[
            pl.BlockSpec((h, h), lambda i: (0, 0)),
            pl.BlockSpec((w, w), lambda i: (0, 0)),
            pl.BlockSpec((tile_b, h, w), lambda i: (i, 0, 0)),
        ],
        out_specs=pl.BlockSpec((tile_b, h, w), lambda i: (i, 0, 0)),
        compiler_params=pltpu.CompilerParams(
            dimension_semantics=("parallel",),
            vmem_limit_bytes=vmem_limit,
        ),
    )(jnp.asarray(s_h), jnp.asarray(s_w_t), xr)

    return out.reshape(n, c, h, w)


# ---------------------------------------------------------------------------
# Reference (pure JAX): depthwise conv with the module-style 2-D kernel
# ---------------------------------------------------------------------------
def _make_gaussian_kernel_2d(kernel_size, sigma):
    if isinstance(kernel_size, (int, float)):
        kernel_size = [int(kernel_size)] * 2
    if isinstance(sigma, (int, float)):
        sigma = [float(sigma)] * 2
    grids = jnp.meshgrid(*[jnp.arange(s, dtype=jnp.float32) for s in kernel_size],
                         indexing="ij")
    kernel = jnp.array(1.0, dtype=jnp.float32)
    for size, std, g in zip(kernel_size, sigma, grids):
        mean = (size - 1) / 2.0
        kernel = kernel * (1.0 / (std * math.sqrt(2.0 * math.pi))
                           * jnp.exp(-(((g - mean) / std) ** 2) / 2.0))
    return kernel / jnp.sum(kernel)


def _reference(x, kernel_size, sigma):
    n, c, h, w = x.shape
    w2d = _make_gaussian_kernel_2d(kernel_size, sigma)
    k = w2d.shape[0]
    pad = int(k / 2)
    xp = jnp.pad(x, ((0, 0), (0, 0), (pad, pad), (pad, pad)), mode="reflect")
    wk = jnp.broadcast_to(w2d[None, None], (c, 1, k, k))
    return lax.conv_general_dilated(
        xp, wk, window_strides=(1, 1), padding="VALID",
        dimension_numbers=("NCHW", "OIHW", "NCHW"),
        feature_group_count=c,
        precision=lax.Precision.HIGHEST)


if __name__ == "__main__":
    key = jax.random.PRNGKey(0)
    N, C, H, W = 2, 4, 16, 16
    kernel_size, sigma = 5, 2.0

    x = jax.random.normal(key, (N, C, H, W), dtype=jnp.float32)

    y = jax.block_until_ready(gaussian_smoothing(x, kernel_size, sigma))
    y_ref = jax.block_until_ready(_reference(x, kernel_size, sigma))

    assert y.shape == (N, C, H, W), y.shape
    err = float(jnp.max(jnp.abs(y - y_ref)))
    assert err < 1e-4, f"max abs error {err}"

    print("KERNEL_OK")
</pallas_src>

<mosaic_0001>
module attributes {stable_mosaic.version = 11 : i64} {
  func.func @_smooth_kernel(%arg0: i32, %arg1: memref<16x16xf32, #tpu.memory_space<vmem>>, %arg2: memref<16x16xf32, #tpu.memory_space<vmem>>, %arg3: memref<4x16x16xf32, #tpu.memory_space<vmem>>, %arg4: memref<4x16x16xf32, #tpu.memory_space<vmem>>) attributes {dimension_semantics = [#tpu.dimension_semantics<parallel>], iteration_bounds = array<i64: 2>, scalar_prefetch = 0 : i64, scratch_operands = 0 : i64, tpu.core_type = #tpu.core_type<tc>, window_params = [{pipeline_mode = #tpu.pipeline_mode<synchronous>, transform_indices = @transform_0, window_bounds = array<i64: 16, 16>}, {pipeline_mode = #tpu.pipeline_mode<synchronous>, transform_indices = @transform_1, window_bounds = array<i64: 16, 16>}, {transform_indices = @transform_2, window_bounds = array<i64: 4, 16, 16>}, {transform_indices = @transform_3, window_bounds = array<i64: 4, 16, 16>}]} {
    %c0 = arith.constant 0 : index
    %c0_0 = arith.constant 0 : index
    %0 = vector.load %arg1[%c0, %c0_0] : memref<16x16xf32, #tpu.memory_space<vmem>>, vector<16x16xf32>
    %c0_1 = arith.constant 0 : index
    %c0_2 = arith.constant 0 : index
    %1 = vector.load %arg2[%c0_1, %c0_2] : memref<16x16xf32, #tpu.memory_space<vmem>>, vector<16x16xf32>
    %c0_3 = arith.constant 0 : index
    %c0_4 = arith.constant 0 : index
    %c0_5 = arith.constant 0 : index
    %2 = vector.load %arg3[%c0_3, %c0_4, %c0_5] : memref<4x16x16xf32, #tpu.memory_space<vmem>>, vector<4x16x16xf32>
    %3 = vector.shape_cast %2 : vector<4x16x16xf32> to vector<64x16xf32>
    %cst = arith.constant dense<0.000000e+00> : vector<64x16xf32>
    %4 = tpu.matmul %3, %1, %cst {dimension_numbers = #tpu.dot_dimension_numbers<[1], [0], [0], [1], [0, 0, 1, 1], [], []>, precision = #tpu.contract_precision<fp32>} : vector<64x16xf32>, vector<16x16xf32>, vector<64x16xf32> -> vector<64x16xf32>
    %5 = vector.shape_cast %4 : vector<64x16xf32> to vector<4x16x16xf32>
    %6 = vector.extract_strided_slice %5 {offsets = [0, 0, 0], sizes = [1, 16, 16], strides = [1, 1, 1]} : vector<4x16x16xf32> to vector<1x16x16xf32>
    %7 = vector.shape_cast %6 : vector<1x16x16xf32> to vector<16x16xf32>
    %cst_6 = arith.constant dense<0.000000e+00> : vector<16x16xf32>
    %8 = tpu.matmul %0, %7, %cst_6 {dimension_numbers = #tpu.dot_dimension_numbers<[1], [0], [0], [1], [0, 0, 1, 1], [], []>, precision = #tpu.contract_precision<fp32>} : vector<16x16xf32>, vector<16x16xf32>, vector<16x16xf32> -> vector<16x16xf32>
    %c0_7 = arith.constant 0 : index
    %c0_8 = arith.constant 0 : index
    %c0_9 = arith.constant 0 : index
    %9 = vector.load %arg4[%c0_7, %c0_8, %c0_9] : memref<4x16x16xf32, #tpu.memory_space<vmem>>, vector<1x16x16xf32>
    %10 = vector.shape_cast %9 : vector<1x16x16xf32> to vector<16x16xf32>
    %11 = vector.shape_cast %8 : vector<16x16xf32> to vector<1x16x16xf32>
    tpu.vector_store %arg4[%c0_7, %c0_8, %c0_9], %11 {strides = array<i32>} : memref<4x16x16xf32, #tpu.memory_space<vmem>>, vector<1x16x16xf32>,
    %12 = vector.extract_strided_slice %5 {offsets = [1, 0, 0], sizes = [1, 16, 16], strides = [1, 1, 1]} : vector<4x16x16xf32> to vector<1x16x16xf32>
    %13 = vector.shape_cast %12 : vector<1x16x16xf32> to vector<16x16xf32>
    %cst_10 = arith.constant dense<0.000000e+00> : vector<16x16xf32>
    %14 = tpu.matmul %0, %13, %cst_10 {dimension_numbers = #tpu.dot_dimension_numbers<[1], [0], [0], [1], [0, 0, 1, 1], [], []>, precision = #tpu.contract_precision<fp32>} : vector<16x16xf32>, vector<16x16xf32>, vector<16x16xf32> -> vector<16x16xf32>
    %c1 = arith.constant 1 : index
    %c0_11 = arith.constant 0 : index
    %c0_12 = arith.constant 0 : index
    %15 = vector.load %arg4[%c1, %c0_11, %c0_12] : memref<4x16x16xf32, #tpu.memory_space<vmem>>, vector<1x16x16xf32>
    %16 = vector.shape_cast %15 : vector<1x16x16xf32> to vector<16x16xf32>
    %17 = vector.shape_cast %14 : vector<16x16xf32> to vector<1x16x16xf32>
    tpu.vector_store %arg4[%c1, %c0_11, %c0_12], %17 {strides = array<i32>} : memref<4x16x16xf32, #tpu.memory_space<vmem>>, vector<1x16x16xf32>,
    %18 = vector.extract_strided_slice %5 {offsets = [2, 0, 0], sizes = [1, 16, 16], strides = [1, 1, 1]} : vector<4x16x16xf32> to vector<1x16x16xf32>
    %19 = vector.shape_cast %18 : vector<1x16x16xf32> to vector<16x16xf32>
    %cst_13 = arith.constant dense<0.000000e+00> : vector<16x16xf32>
    %20 = tpu.matmul %0, %19, %cst_13 {dimension_numbers = #tpu.dot_dimension_numbers<[1], [0], [0], [1], [0, 0, 1, 1], [], []>, precision = #tpu.contract_precision<fp32>} : vector<16x16xf32>, vector<16x16xf32>, vector<16x16xf32> -> vector<16x16xf32>
    %c2 = arith.constant 2 : index
    %c0_14 = arith.constant 0 : index
    %c0_15 = arith.constant 0 : index
    %21 = vector.load %arg4[%c2, %c0_14, %c0_15] : memref<4x16x16xf32, #tpu.memory_space<vmem>>, vector<1x16x16xf32>
    %22 = vector.shape_cast %21 : vector<1x16x16xf32> to vector<16x16xf32>
    %23 = vector.shape_cast %20 : vector<16x16xf32> to vector<1x16x16xf32>
    tpu.vector_store %arg4[%c2, %c0_14, %c0_15], %23 {strides = array<i32>} : memref<4x16x16xf32, #tpu.memory_space<vmem>>, vector<1x16x16xf32>,
    %24 = vector.extract_strided_slice %5 {offsets = [3, 0, 0], sizes = [1, 16, 16], strides = [1, 1, 1]} : vector<4x16x16xf32> to vector<1x16x16xf32>
    %25 = vector.shape_cast %24 : vector<1x16x16xf32> to vector<16x16xf32>
    %cst_16 = arith.constant dense<0.000000e+00> : vector<16x16xf32>
    %26 = tpu.matmul %0, %25, %cst_16 {dimension_numbers = #tpu.dot_dimension_numbers<[1], [0], [0], [1], [0, 0, 1, 1], [], []>, precision = #tpu.contract_precision<fp32>} : vector<16x16xf32>, vector<16x16xf32>, vector<16x16xf32> -> vector<16x16xf32>
    %c3 = arith.constant 3 : index
    %c0_17 = arith.constant 0 : index
    %c0_18 = arith.constant 0 : index
    %27 = vector.load %arg4[%c3, %c0_17, %c0_18] : memref<4x16x16xf32, #tpu.memory_space<vmem>>, vector<1x16x16xf32>
    %28 = vector.shape_cast %27 : vector<1x16x16xf32> to vector<16x16xf32>
    %29 = vector.shape_cast %26 : vector<16x16xf32> to vector<1x16x16xf32>
    tpu.vector_store %arg4[%c3, %c0_17, %c0_18], %29 {strides = array<i32>} : memref<4x16x16xf32, #tpu.memory_space<vmem>>, vector<1x16x16xf32>,
    return
  }
  func.func @transform_0(%arg0: i32) -> (i32, i32) {
    %c0_i32 = arith.constant 0 : i32
    %c0_i32_0 = arith.constant 0 : i32
    %c0_i32_1 = arith.constant 0 : i32
    return %c0_i32, %c0_i32_0 : i32, i32
  }
  func.func @transform_1(%arg0: i32) -> (i32, i32) {
    %c0_i32 = arith.constant 0 : i32
    %c0_i32_0 = arith.constant 0 : i32
    %c0_i32_1 = arith.constant 0 : i32
    return %c0_i32, %c0_i32_0 : i32, i32
  }
  func.func @transform_2(%arg0: i32) -> (i32, i32, i32) {
    %c0_i32 = arith.constant 0 : i32
    %c0_i32_0 = arith.constant 0 : i32
    %c0_i32_1 = arith.constant 0 : i32
    return %arg0, %c0_i32, %c0_i32_0 : i32, i32, i32
  }
  func.func @transform_3(%arg0: i32) -> (i32, i32, i32) {
    %c0_i32 = arith.constant 0 : i32
    %c0_i32_0 = arith.constant 0 : i32
    %c0_i32_1 = arith.constant 0 : i32
    return %arg0, %c0_i32, %c0_i32_0 : i32, i32, i32
  }
}

</mosaic_0001>

<bundles_post_ra>
// kernel: tpu_custom_call.1
= control target key start
LH: loop header
LB: loop body
LE: loop exit
PB: predicated region body
PF: predicated region fallthrough
CT: control target
= control target key end

     0   :  { %8 = vsyncpa [#allocation3], 0  ;;  %s4418_s0 = inlined_call_operand.hbm [shape: f32[16,16], index: 0, kind: input, shape index: {}]   ;;  %s4419_s1 = inlined_call_operand.hbm [shape: f32[16,16], index: 1, kind: input, shape index: {}]   ;;  %s4420_s2 = inlined_call_operand.hbm [shape: f32[8,16,16], index: 2, kind: input, shape index: {}]   ;;  %s4421_s3 = inlined_call_operand.hbm [shape: f32[8,16,16], index: 3, kind: output, shape index: {}]  }
   0x1   :  { %9 = vsyncpa [#allocation6], 0 }
   0x2   :  { %10 = vsyncpa [#allocation4], 0 }
   0x3   :  { %12 = vsyncpa [#allocation4 + $0x1], 0  ;;  %s3851_s12 = smov 0   ;;  %s3853_s13 = smov 0  }
   0x4   :  { %s3855_s14 = smov 0   ;;  %s3857_s15 = smov 0  }
   0x5 LB: > { %s3872_s16 = sadd.s32 4294967295, %s3821_s15   ;;  %s3148_s17 = sadd.s32 4294967294, %s3821_s15   ;;  %s3821_s15 = sphi %s3857_s15, %s4445_s15   ;;  %s3817_s14 = sphi %s3855_s14, %s4444_s14   ;;  %s3813_s13 = sphi %s3853_s13, %s4443_s13   ;;  %s3809_s12 = sphi %s3851_s12, %s4442_s12  }
   0x6   : > { %s3876_s18 = sadd.s32 1, %s3821_s15   ;;  %s67_s19 = sadd.s32 1, %s3817_s14 }
   0x7   : > { %s64_s20 = ssub.s32 %s3821_s15, %s3876_s18  ;;  %p74_p0 = scmp.ne.s32.totalorder %s3817_s14, %s3813_s13 }
   0x8   : > { %p65_p1 = scmp.eq.s32.totalorder %s64_s20, 0  ;;  %p75_p2 = scmp.eq.s32.totalorder %s3821_s15, 0 }
   0x9   : > { %p80_p3 = scmp.ne.s32.totalorder %s3813_s13, %s3809_s12  ;;  %p4423_p4 = scmp.eq.s32.totalorder %s3872_s16, 0 }
   0xa   : > { %s3888_s21 = scalar_select %p65_p1, %s3817_s14, %s67_s19  }
   0xb   : > { %p3890_p5 = por %p75_p2, %p74_p0  ;;  %p3896_p6 = por %p4423_p4, %p80_p3 }
   0xc   : > { %p104_p7 = scmp.eq.s32.totalorder %s3872_s16, 1  ;;  %p110_p8 = scmp.eq.s32.totalorder %s3148_s17, 1 }
   0xd   : > { %s4427_s23 = scalar_select %p3896_p6, 1, 0 }
   0xe   : > { %p3149_p9 = scmp.ge.s32.totalorder %s3821_s15, 1  ;;  %p117_p10 = scmp.lt.s32.totalorder %s3821_s15, 3 }
   0xf   : > { %p3903_p11 = por %p104_p7, %p74_p0  ;;  %p3907_p12 = por %p110_p8, %p80_p3 }
  0x10   : > { %p3911_p13 = pnand %p3149_p9, %p117_p10  ;;  %s3823_s27 = smov [#allocation2]  }
  0x11   : > { %s4428_s24 = scalar_select %p3903_p11, 1, 0 }
  0x12   : > { %s4429_s25 = scalar_select %p3907_p12, 1, 0 }
  0x13   : > { %s4430_s26 = scalar_select %p3911_p13, 1, 0 }
  0x14   : > { %p3610_p1 = pneg %p3911_p13  ;;  %s129_s28 = sshll.u32 %s3823_s27, 4  ;;  %s130_s28 = int_to_ptr.vmem [resolvable:$true] %s129_s28 }
  0x15   : > { %p3627_p3 = scmp.lt.s32.totalorder %s3821_s15, 2  ;;  %s3824_s30 = smov [#allocation5]  }
  0x16   : > { %p3919_p2 = pnand %p3610_p1, %p4423_p4  ;;  %s142_s4 = sshll.u32 %s3824_s30, 4  ;;  %s143_s4 = int_to_ptr.vmem [resolvable:$true] %s142_s4 }
  0x17   : > { %s3680_s5 = scalar_lea.vmem %s130_s28, 256  ;;  %p3688_p12 = scmp.lt.s32.totalorder %s130_s28, %s130_s28 }
  0x18   : > { %p3671_p7 = pneg %p3919_p2  ;;  %p3681_p8 = scmp.ne.s32.totalorder %s130_s28, %s3680_s5 }
  0x19   : > { %p3689_p11 = scmp.lt.s32.totalorder %s3680_s5, %s3680_s5 }
  0x1a   : > { %p3683_p9 = pnand %p3681_p8, %p3671_p7 }
  0x1b   : > { %p3690_p1 = por %p3689_p11, %p3688_p12 }
  0x1c   : > { %p3684_p10 = pneg %p3683_p9 }
  0x1e   : > { %p3691_p4 = pnand %p3690_p1, %p3684_p10 }
  0x20   : > { %3694 = shalt.err (!%p3691_p4)
}
  0x21   : > { %s3825_s6 = smov 128   ;;  %s3826_s7 = smov 8  }
  0x22   : > { %3613 = dma.hbm_to_vmem [thread:$0]  (!%p3919_p2), %s4418_s0, 256, %s130_s28, [#allocation3], %s3825_s6, %s3825_s6, %s3826_s7  }
  0x23   : > { %p3942_p8 = pnand %p3627_p3, %p3890_p5  ;;  %s3706_s11 = scalar_lea.vmem %s143_s4, 256 }
  0x24   : > { %p3707_p4 = scmp.ne.s32.totalorder %s143_s4, %s3706_s11  ;;  %p3714_p9 = scmp.lt.s32.totalorder %s143_s4, %s143_s4 }
  0x25   : > { %p3715_p10 = scmp.lt.s32.totalorder %s3706_s11, %s3706_s11 }
  0x26   : > { %p3709_p11 = pnand %p3707_p4, %p3671_p7 }
  0x27   : > { %p3716_p1 = por %p3715_p10, %p3714_p9 }
  0x28   : > { %p3710_p12 = pneg %p3709_p11 }
  0x2a   : > { %p3717_p0 = pnand %p3716_p1, %p3710_p12 }
  0x2c   : > { %3720 = shalt.err (!%p3717_p0)
}
  0x2d   : > { %3616 = dma.hbm_to_vmem [thread:$0]  (!%p3919_p2), %s4419_s1, 256, %s143_s4, [#allocation6], %s3825_s6, %s3825_s6, %s3826_s7  }
  0x2e   : > { %s156_s20 = sand.u32 1, %s3821_s15   ;;  %s158_s22 = sand.u32 1, %s3817_s14  }
  0x2f   : > { %s3153_s27 = sshll.u32 %s158_s22, 6  ;;  %s3175_s28 = sshll.u32 %s3821_s15, 10 }
  0x30   : > { %s3963_s8 = scalar_lea.hbm %s4420_s2, %s3175_s28  ;;  %s160_s29 = scalar_lea.vmem [#allocation7], %s3153_s27 }
  0x31   : > { %s168_s9 = sshll.u32 %s160_s29, 4  ;;  %s3967_s11 = scalar_lea.sflag [#allocation3], %s156_s20  ;;  %s3965_s9 = int_to_ptr.vmem [resolvable:$true] %s168_s9 }
  0x32   : > { %s3721_s17 = scalar_lea.hbm %s3963_s8, 1024  ;;  %p3723_p2 = pneg %p3942_p8 }
  0x33   : > { %p3722_p5 = scmp.ne.s32.totalorder %s3963_s8, %s3721_s17  ;;  %s3726_s22 = scalar_lea.hbm %s4420_s2, 2048 }
  0x34   : > { %p3727_p7 = scmp.lt.s32.totalorder %s3963_s8, %s4420_s2  ;;  %p3728_p4 = scmp.lt.s32.totalorder %s3726_s22, %s3721_s17 }
  0x35   : > { %p3724_p0 = pnand %p3723_p2, %p3722_p5 }
  0x36   : > { %p3729_p11 = por %p3728_p4, %p3727_p7 }
  0x37   : > { %p3725_p3 = pneg %p3724_p0 }
  0x39   : > { %p3730_p12 = pnand %p3729_p11, %p3725_p3 }
  0x3b   : > { %3733 = shalt.err (!%p3730_p12)
}
  0x3c   : > { %s3734_s20 = scalar_lea.vmem %s3965_s9, 1024  ;;  %s3827_s27 = smov [#allocation7]  }
  0x3d   : > { %p3735_p9 = scmp.ne.s32.totalorder %s3965_s9, %s3734_s20  ;;  %s3739_s5 = sshll.u32 %s3827_s27, 4  ;;  %s3740_s5 = int_to_ptr.vmem [resolvable:$false] %s3739_s5 }
  0x3e   : > { %s3741_s29 = scalar_lea.vmem %s3740_s5, 2048  ;;  %p3742_p5 = scmp.lt.s32.totalorder %s3965_s9, %s3740_s5 }
  0x3f   : > { %p3737_p10 = pnand %p3735_p9, %p3723_p2  ;;  %p3743_p0 = scmp.lt.s32.totalorder %s3741_s29, %s3734_s20 }
  0x41   : > { %p3738_p1 = pneg %p3737_p10  ;;  %p3744_p6 = por %p3743_p0, %p3742_p5 }
  0x43   : > { %p3745_p13 = pnand %p3744_p6, %p3738_p1 }
  0x45   : > { %3748 = shalt.err (!%p3745_p13)
}
  0x46   : > { %3620 = dma.hbm_to_vmem [thread:$0]  (!%p3942_p8), %s3963_s8, 1024, %s3965_s9, %s3967_s11, %s3825_s6, %s3825_s6, %s3826_s7  }
  0x47   : > { %p4433_p2 = scmp.ne.s32.totalorder %s4430_s26, 0 }
  0x48   : > { %p4434_p3 = scmp.eq.s32.totalorder (!%p4433_p2), %s3872_s16, 0 }
  0x49   : > { %180 = sbr.rel (%p4433_p2) target bundleno = 618 (0x26a), region = 32 }
  0x4e   : > { %3792 = dma.done.wait (%p4434_p3), [#allocation3], 256   ;;  %p4435_p7 = pmov %p4434_p3 }
  0x4f   : > { %p4436_p6 = pmov %p4434_p3 }
  0x50   : > { %3794 = vsyncadd (%p4435_p7), [#allocation3], 4294967040 }
  0x51   : > { %3796 = dma.done.wait (%p4436_p6), [#allocation6], 256   ;;  %p4437_p13 = pmov %p4434_p3 }
  0x52   : > { %s190_s6 = sand.u32 1, %s3872_s16   ;;  %s192_s7 = sand.u32 1, %s3813_s13  }
  0x53   : > { %3798 = vsyncadd (%p4437_p13), [#allocation6], 4294967040  ;;  %s4005_s26 = sshll.u32 %s192_s7, 6  ;;  %s191_s10 = scalar_lea.sflag [#allocation3], %s190_s6 }
  0x54   : > { %s4008_s8 = scalar_lea.vmem [#allocation7], %s4005_s26  ;;  %p4438_p8 = scmp.ne.s32.totalorder %s4427_s23, 0 }
  0x56   : > { %3800 = dma.done.wait (%p4438_p8), %s191_s10, 1024  }
  0x57   : > { %3802 = vsyncadd (%p4438_p8), %s191_s10, 4294966272  ;;  %vm231_vm0 = vcmask 130048   ;;  %v222_v0 = vld [vmem:[#allocation5 + $0x8] sm:$0xff]  ;;  %v221_v1 = vld [vmem:[#allocation5] sm:$0xff]  ;;  %s4348_s23 = scalar_lea.vmem [#allocation8], %s4005_s26  ;;  %s3177_s9 = sshll.u32 %s3872_s16, 10 }
  0x58   : > { %v223_v2 = vld [vmem:[%s4008_s8] sm:$0xff]  ;;  %v4015_v3 = vand.u32 4294901760, %v222_v0  ;;  %v4017_v4 = vand.u32 4294901760, %v221_v1  ;;  %v224_v6 = vld [vmem:[%s4008_s8 + $0x8] sm:$0xff]  ;;  %v225_v7 = vld [vmem:[%s4008_s8 + $0x10] sm:$0xff]  ;;  %s3056_s11 = sshll.u32 %s4348_s23, 4  ;;  %s4367_s19 = scalar_lea.hbm %s4421_s3, %s3177_s9  ;;  %s4369_s11 = int_to_ptr.vmem [resolvable:$true] %s3056_s11 }
  0x59   : > { %v233_v5 = vsel %vm231_vm0, %v223_v2, 0  ;;  %v226_v8 = vld [vmem:[%s4008_s8 + $0x18] sm:$0xff]  ;;  %v236_v10 = vsel %vm231_vm0, %v224_v6, 0  ;;  %v239_v11 = vsel %vm231_vm0, %v225_v7, 0  ;;  %v227_v13 = vld [vmem:[%s4008_s8 + $0x20] sm:$0xff]  ;;  %v228_v14 = vld [vmem:[%s4008_s8 + $0x28] sm:$0xff] }
  0x5a   : > { %v4023_v9 = vand.u32 4294901760, %v233_v5  ;;  %v242_v12 = vsel %vm231_vm0, %v226_v8, 0  ;;  %3334 = vmatprep.subr.mxu0 %v4015_v3  ;;  %v433_v15 = vsub.f32 %v222_v0, %v4015_v3  ;;  %v4032_v16 = vand.u32 4294901760, %v236_v10  ;;  %v229_v39 = vld [vmem:[%s4008_s8 + $0x30] sm:$0xff]  ;;  %v230_v40 = vld [vmem:[%s4008_s8 + $0x38] sm:$0xff]  ;;  %s4377_s16 = scalar_lea.sflag [#allocation4], %s192_s7 }
  0x5b   : > { %v4035_v17 = vsub.f32 %v221_v1, %v4017_v4  ;;  %v4037_v18 = vand.u32 4294901760, %v239_v11  ;;  %3335 = vmatpush3.msra.mxu0 %v4015_v3  ;;  %v4044_v20 = vand.u32 4294901760, %v242_v12  ;;  %v245_v21 = vsel %vm231_vm0, %v227_v13, 0  ;;  %s3749_s22 = scalar_lea.vmem %s4369_s11, 1024  ;;  %p4439_p11 = scmp.ne.s32.totalorder %s4428_s24, 0 }
  0x5c   : > { %v4041_v19 = vsub.f32 %v233_v5, %v4023_v9  ;;  %3354 = vmatprep.mubr.f32.mxu1 %v4023_v9  ;;  %v248_v22 = vsel %vm231_vm0, %v228_v14, 0  ;;  %3336 = vmatprep.subr.mxu0 %v4017_v4  ;;  %v4049_v23 = vand.u32 4294901760, %v433_v15  ;;  %v4052_v24 = vsub.f32 %v236_v10, %v4032_v16  ;;  %p3750_p4 = scmp.ne.s32.totalorder %s4369_s11, %s3749_s22  ;;  %s3828_s28 = smov [#allocation8]  }
  0x5d   : > { %v4055_v25 = vand.u32 4294901760, %v4035_v17  ;;  %v4058_v26 = vsub.f32 %v239_v11, %v4037_v18  ;;  %3337 = vmatpush3.msra.mxu0 %v4017_v4  ;;  %v4063_v28 = vsub.f32 %v242_v12, %v4044_v20  ;;  %v4065_v29 = vand.u32 4294901760, %v245_v21  ;;  %s3753_s30 = sshll.u32 %s3828_s28, 4  ;;  %s3754_s30 = int_to_ptr.vmem [resolvable:$false] %s3753_s30 }
  0x5e   : > { %v325_v27 = vand.u32 4294901760, %v4041_v19  ;;  %v4067_v30 = vand.u32 4294901760, %v248_v22  ;;  %v435_v31 = vsub.f32 %v433_v15, %v4049_v23  ;;  %v335_v32 = vand.u32 4294901760, %v4052_v24  ;;  %3366 = vmatprep.subr.mxu0 %v433_v15  ;;  %p3751_p12 = pnand %p3750_p4, %p4439_p11  ;;  %s3755_s20 = scalar_lea.vmem %s3754_s30, 2048 }
  0x5f   : > { %v442_v33 = vsub.f32 %v4035_v17, %v4055_v25  ;;  %v345_v34 = vand.u32 4294901760, %v4058_v26  ;;  %v355_v36 = vand.u32 4294901760, %v4063_v28  ;;  %v4079_v37 = vsub.f32 %v245_v21, %v4065_v29  ;;  %p3756_p10 = scmp.lt.s32.totalorder %s4369_s11, %s3754_s30  ;;  %p3757_p1 = scmp.lt.s32.totalorder %s3755_s20, %s3749_s22 }
  0x60   : > { %v326_v35 = vsub.f32 %v4041_v19, %v325_v27  ;;  %v4082_v38 = vsub.f32 %v248_v22, %v4067_v30  ;;  %v436_v41 = vand.u32 4294901760, %v435_v31  ;;  %v336_v42 = vsub.f32 %v4052_v24, %v335_v32  ;;  %p3752_p9 = pneg %p3751_p12 }
  0x61   : > { %v443_v43 = vand.u32 4294901760, %v442_v33  ;;  %v346_v44 = vsub.f32 %v4058_v26, %v345_v34  ;;  %v356_v46 = vsub.f32 %v4063_v28, %v355_v36  ;;  %v365_v47 = vand.u32 4294901760, %v4079_v37  ;;  %p3758_p5 = por %p3757_p1, %p3756_p10 }
  0x62   : > { %v327_v45 = vand.u32 4294901760, %v326_v35  ;;  %v375_v48 = vand.u32 4294901760, %v4082_v38  ;;  %3350 = vmatprep.subr.mxu1 %v436_v41  ;;  %v337_v49 = vand.u32 4294901760, %v336_v42  ;;  %v251_v51 = vsel %vm231_vm0, %v229_v39, 0 }
  0x63   : > { %v347_v50 = vand.u32 4294901760, %v346_v44  ;;  %v254_v52 = vsel %vm231_vm0, %v230_v40, 0  ;;  %3351 = vmatpush3.msra.mxu1 %v436_v41  ;;  %v366_v53 = vsub.f32 %v4079_v37, %v365_v47  ;;  %v4100_v54 = vand.u32 4294901760, %v251_v51  ;;  %p3759_p0 = pnand %p3758_p5, %p3752_p9 }
  0x64   : > { %3338 = vmatprep.mubr.f32.mxu0 %v327_v45  ;;  %3352 = vmatprep.subr.mxu1 %v443_v43  ;;  %v357_v55 = vand.u32 4294901760, %v356_v46  ;;  %v376_v56 = vsub.f32 %v4082_v38, %v375_v48  ;;  %v4105_v57 = vand.u32 4294901760, %v254_v52 }
  0x65   : > { %3339 = vmatmul.mubr.f32.vlgmr.msra.gmra.mxu0 %v337_v49  ;;  %3353 = vmatpush3.msra.mxu1 %v443_v43  ;;  %v367_v58 = vand.u32 4294901760, %v366_v53  ;;  %v384_v59 = vsub.f32 %v251_v51, %v4100_v54 }
  0x66   : > { %3341 = vmatprep.mubr.f32.mxu0 %v347_v50  ;;  %3355 = vmatmul.mubr.f32.vlgmr.msra.gmra.mxu1 %v4032_v16  ;;  %v394_v60 = vsub.f32 %v254_v52, %v4105_v57  ;;  %v377_v62 = vand.u32 4294901760, %v376_v56 }
  0x67   : > { %3367 = vmatpush3.msra.mxu0 %v433_v15  ;;  %3357 = vmatprep.mubr.f32.mxu1 %v4037_v18  ;;  %v385_v61 = vand.u32 4294901760, %v384_v59 }
  0x68   : > { %3368 = vmatprep.subr.mxu0 %v4035_v17  ;;  %v395_v63 = vand.u32 4294901760, %v394_v60  ;;  %3382 = vmatprep.subr.mxu1 %v4015_v3 }
  0x69   : > { %3342 = vmatmul.mubr.f32.gmra.mxu0 %v357_v55  ;;  %v386_v0 = vsub.f32 %v384_v59, %v385_v61  ;;  %3383 = vmatpush3.msra.mxu1 %v4015_v3 }
  0x6a   : > { %3344 = vmatprep.mubr.f32.mxu0 %v367_v58  ;;  %3369 = vmatpush3.msra.mxu0 %v4035_v17  ;;  %v396_v1 = vsub.f32 %v394_v60, %v395_v63 }
  0x6b   : > { %3358 = vmatmul.mubr.f32.gmra.mxu1 %v4044_v20  ;;  %3398 = vmatprep.subr.mxu0 %v4049_v23  ;;  %v387_v2 = vand.u32 4294901760, %v386_v0 }
  0x6c   : > { %3360 = vmatprep.mubr.f32.mxu1 %v4065_v29  ;;  %v397_v5 = vand.u32 4294901760, %v396_v1  ;;  %3384 = vmatprep.subr.mxu1 %v4017_v4 }
  0x6d   : > { %3345 = vmatmul.mubr.f32.gmra.mxu0 %v377_v62  ;;  %3385 = vmatpush3.msra.mxu1 %v4017_v4 }
  0x6e   : > { %3347 = vmatprep.mubr.f32.mxu0 %v387_v2  ;;  %3414 = vmatprep.subr.mxu1 %v4015_v3 }
  0x6f   : > { %3361 = vmatmul.mubr.f32.gmra.mxu1 %v4067_v30 }
  0x70   : > { %3363 = vmatprep.mubr.f32.mxu1 %v4100_v54 }
  0x71   : > { %3348 = vmatmul.mubr.f32.gmra.mxu0 %v397_v5 }
  0x72   : > { %3370 = vmatprep.mubr.f32.mxu0 %v4041_v19 }
  0x73   : > { %3364 = vmatmul.mubr.f32.gmra.mxu1 %v4105_v57 }
  0x74   : > { %3386 = vmatprep.mubr.f32.mxu1 %v325_v27 }
  0x75   : > { %3371 = vmatmul.mubr.f32.vlgmr.msra.gmra.mxu0 %v4052_v24 }
  0x76   : > { %3373 = vmatprep.mubr.f32.mxu0 %v4058_v26  ;;  %3399 = vmatpush3.msra.mxu0 %v4049_v23 }
  0x77   : > { %3387 = vmatmul.mubr.f32.vlgmr.msra.gmra.mxu1 %v335_v32  ;;  %3400 = vmatprep.subr.mxu0 %v4055_v25 }
  0x78   : > { %3389 = vmatprep.mubr.f32.mxu1 %v345_v34  ;;  %3401 = vmatpush3.msra.mxu0 %v4055_v25 }
  0x79   : > { %3374 = vmatmul.mubr.f32.gmra.mxu0 %v4063_v28  ;;  %3415 = vmatpush3.msra.mxu1 %v4015_v3  ;;  %v219_v3 = vld [vmem:[#allocation2] sm:$0xff]  ;;  %v220_v28 = vld [vmem:[#allocation2 + $0x8] sm:$0xff] }
  0x7a   : > { %3376 = vmatprep.mubr.f32.mxu0 %v4079_v37  ;;  %3416 = vmatprep.subr.mxu1 %v4017_v4  ;;  %v1020_v31 = vsel %vm231_vm0, %v220_v28, 0 }
  0x7b   : > { %3390 = vmatmul.mubr.f32.gmra.mxu1 %v355_v36  ;;  %v4194_v36 = vand.u32 4294901760, %v1020_v31 }
  0x7c   : > { %3392 = vmatprep.mubr.f32.mxu1 %v365_v47  ;;  %3417 = vmatpush3.msra.mxu1 %v4017_v4  ;;  %v1017_v4 = vsel %vm231_vm0, %v219_v3, 0 }
  0x7d   : > { %3377 = vmatmul.mubr.f32.gmra.mxu0 %v4082_v38  ;;  %v4163_v6 = vand.u32 4294901760, %v1017_v4  ;;  %v4203_v42 = vsub.f32 %v1020_v31, %v4194_v36 }
  0x7e   : > { %3379 = vmatprep.mubr.f32.mxu0 %v384_v59 }
  0x7f   : > { %3393 = vmatmul.mubr.f32.gmra.mxu1 %v375_v48  ;;  %v4166_v7 = vsub.f32 %v1017_v4, %v4163_v6  ;;  %v4214_v51 = vand.u32 4294901760, %v4203_v42 }
  0x80   : > { %3395 = vmatprep.mubr.f32.mxu1 %v385_v61 }
  0x81   : > { %3380 = vmatmul.mubr.f32.gmra.mxu0 %v394_v60  ;;  %v4170_v8 = vand.u32 4294901760, %v4166_v7  ;;  %v1102_v61 = vsub.f32 %v4203_v42, %v4214_v51 }
  0x82   : > { %3402 = vmatprep.mubr.f32.mxu0 %v4023_v9 }
  0x83   : > { %3396 = vmatmul.mubr.f32.gmra.mxu1 %v395_v63 }
  0x84   : > { %3418 = vmatprep.mubr.f32.mxu1 %v4023_v9  ;;  %v1092_v9 = vsub.f32 %v4166_v7, %v4170_v8 }
  0x85   : > { %3403 = vmatmul.mubr.f32.vlgmr.msra.gmra.mxu0 %v4032_v16 }
  0x86   : > { %3405 = vmatprep.mubr.f32.mxu0 %v4037_v18  ;;  %v4174_v10 = vand.u32 4294901760, %v1092_v9 }
  0x87   : > { %3419 = vmatmul.mubr.f32.vlgmr.msra.gmra.mxu1 %v4032_v16 }
  0x88   : > { %3421 = vmatprep.mubr.f32.mxu1 %v4037_v18 }
  0x89   : > { %3406 = vmatmul.mubr.f32.gmra.mxu0 %v4044_v20 }
  0x8a   : > { %3408 = vmatprep.mubr.f32.mxu0 %v4065_v29 }
  0x8b   : > { %3422 = vmatmul.mubr.f32.gmra.mxu1 %v4044_v20 }
  0x8c   : > { %3424 = vmatprep.mubr.f32.mxu1 %v4065_v29 }
  0x8d   : > { %3409 = vmatmul.mubr.f32.gmra.mxu0 %v4067_v30 }
  0x8e   : > { %3411 = vmatprep.mubr.f32.mxu0 %v4100_v54 }
  0x8f   : > { %3425 = vmatmul.mubr.f32.gmra.mxu1 %v4067_v30 }
  0x90   : > { %3427 = vmatprep.mubr.f32.mxu1 %v4100_v54 }
  0x91   : > { %3412 = vmatmul.mubr.f32.gmra.mxu0 %v4105_v57 }
  0x92   : > { %3434 = vmatprep.mubr.f32.mxu0 %v4174_v10 }
  0x93   : > { %3428 = vmatmul.mubr.f32.gmra.mxu1 %v4105_v57 }
  0x94   : > { %3441 = vmatprep.mubr.f32.mxu1 %v4163_v6 }
 0x125   : > { %v3340_v11 = vpop.f32.mrf.mxu0 }
 0x126   : > { %v3356_v13 = vpop.f32.mrf.mxu1 }
 0x127   : > { %v329_v12 = vpop.f32.mrf.mxu0  ;;  %v487_v39 = vadd.f32 %v3356_v13, %v3340_v11 }
 0x128   : > { %v480_v15 = vpop.f32.mrf.mxu1 }
 0x129   : > { %v3343_v14 = vpop.f32.mrf.mxu0  ;;  %v481_v43 = vadd.f32 %v480_v15, %v329_v12 }
 0x12b   : > { %v349_v16 = vpop.f32.mrf.mxu0  ;;  %v3359_v17 = vpop.f32.mrf.mxu1 }
 0x12c   : > { %v499_v47 = vadd.f32 %v3359_v17, %v3343_v14 }
 0x12d   : > { %v4177_v18 = vpop.f32.mrf.mxu0  ;;  %v492_v19 = vpop.f32.mrf.mxu1 }
 0x12e   : > { %v493_v56 = vadd.f32 %v492_v19, %v349_v16  ;;  %v4226_v16 = vand.u32 4294901760, %v1102_v61 }
 0x12f   : > { %v4179_v20 = vpop.f32.mrf.mxu0  ;;  %v4181_v21 = vpop.f32.mrf.mxu1 }
 0x131   : > { %v4183_v22 = vpop.f32.mrf.mxu0  ;;  %v4185_v23 = vpop.f32.mrf.mxu1 }
 0x133   : > { %v4187_v24 = vpop.f32.mrf.mxu0  ;;  %v4189_v25 = vpop.f32.mrf.mxu1 }
 0x135   : > { %v4191_v26 = vpop.f32.mrf.mxu1  ;;  %v3372_v27 = vpop.f32.mrf.mxu0 }
 0x136   : > { %v606_v44 = vadd.f32 %v3372_v27, %v487_v39 }
 0x137   : > { %v598_v29 = vpop.f32.mrf.mxu0  ;;  %v3388_v30 = vpop.f32.mrf.mxu1 }
 0x138   : > { %v599_v48 = vadd.f32 %v598_v29, %v481_v43  ;;  %v731_v52 = vadd.f32 %v3388_v30, %v606_v44 }
 0x139   : > { %v3375_v32 = vpop.f32.mrf.mxu0  ;;  %v722_v33 = vpop.f32.mrf.mxu1 }
 0x13a   : > { %v620_v53 = vadd.f32 %v3375_v32, %v499_v47  ;;  %v723_v57 = vadd.f32 %v722_v33, %v599_v48  ;;  %v505_v48 = vadd.f32 %v4185_v23, %v4179_v20 }
 0x13b   : > { %v612_v34 = vpop.f32.mrf.mxu0  ;;  %v3391_v35 = vpop.f32.mrf.mxu1 }
 0x13c   : > { %v613_v62 = vadd.f32 %v612_v34, %v493_v56  ;;  %v747_v63 = vadd.f32 %v3391_v35, %v620_v53 }
 0x13d   : > { %v4196_v37 = vpop.f32.mrf.mxu0  ;;  %v738_v38 = vpop.f32.mrf.mxu1 }
 0x13e   : > { %v739_v13 = vadd.f32 %v738_v38, %v613_v62  ;;  %v511_v38 = vadd.f32 %v4181_v21, %v4177_v18 }
 0x13f   : > { %v4198_v40 = vpop.f32.mrf.mxu0  ;;  %v4200_v41 = vpop.f32.mrf.mxu1 }
 0x140   : > { %v634_v43 = vadd.f32 %v4196_v37, %v511_v38  ;;  %v627_v21 = vadd.f32 %v4198_v40, %v505_v48 }
 0x141   : > { %v4205_v45 = vpop.f32.mrf.mxu0  ;;  %v4207_v46 = vpop.f32.mrf.mxu1 }
 0x142   : > { %v763_v37 = vadd.f32 %v4200_v41, %v634_v43  ;;  %v755_v41 = vadd.f32 %v4207_v46, %v627_v21 }
 0x143   : > { %v4209_v49 = vpop.f32.mrf.mxu0  ;;  %v4211_v50 = vpop.f32.mrf.mxu1 }
 0x145   : > { %v4216_v54 = vpop.f32.mrf.mxu1  ;;  %v3404_v55 = vpop.f32.mrf.mxu0 }
 0x146   : > { %v862_v58 = vadd.f32 %v3404_v55, %v731_v52 }
 0x147   : > { %v855_v59 = vpop.f32.mrf.mxu0  ;;  %v3420_v60 = vpop.f32.mrf.mxu1 }
 0x148   : > { %v856_v0 = vadd.f32 %v855_v59, %v723_v57  ;;  %v977_v1 = vadd.f32 %v3420_v60, %v862_v58 }
 0x149   : > { %v3407_v2 = vpop.f32.mrf.mxu0  ;;  %v970_v5 = vpop.f32.mrf.mxu1 }
 0x14a   : > { %v4220_v3 = vand.u32 4294901760, %v977_v1  ;;  %v874_v4 = vadd.f32 %v3407_v2, %v747_v63  ;;  %v971_v9 = vadd.f32 %v970_v5, %v856_v0  ;;  %v523_v63 = vadd.f32 %v4189_v25, %v4183_v22 }
 0x14b   : > { %v867_v11 = vpop.f32.mrf.mxu0  ;;  %v3423_v12 = vpop.f32.mrf.mxu1  ;;  %v517_v22 = vadd.f32 %v4191_v26, %v4187_v24 }
 0x14c   : > { %v1139_v14 = vsub.f32 %v977_v1, %v4220_v3  ;;  %v4223_v15 = vand.u32 4294901760, %v971_v9  ;;  %3430 = vmatprep.subr.mxu0 %v4220_v3  ;;  %v868_v19 = vadd.f32 %v867_v11, %v739_v13  ;;  %v989_v27 = vadd.f32 %v3423_v12, %v874_v4 }
 0x14d   : > { %3431 = vmatpush3.msra.mxu0 %v4220_v3  ;;  %v982_v28 = vpop.f32.mrf.mxu1  ;;  %v3410_v18 = vpop.f32.mrf.mxu0  ;;  %v648_v1 = vadd.f32 %v4205_v45, %v523_v63  ;;  %v641_v45 = vadd.f32 %v4209_v49, %v517_v22 }
 0x14e   : > { %v1146_v17 = vsub.f32 %v971_v9, %v4223_v15  ;;  %3432 = vmatprep.subr.mxu0 %v4223_v15  ;;  %v1140_v29 = vand.u32 4294901760, %v1139_v14  ;;  %v4234_v32 = vand.u32 4294901760, %v989_v27  ;;  %v983_v33 = vadd.f32 %v982_v28, %v868_v19 }
 0x14f   : > { %3433 = vmatpush3.msra.mxu0 %v4223_v15  ;;  %v886_v20 = vadd.f32 %v3410_v18, %v763_v37  ;;  %v879_v23 = vpop.f32.mrf.mxu0  ;;  %v3426_v40 = vpop.f32.mrf.mxu1 }
 0x150   : > { %3444 = vmatprep.subr.mxu0 %v1139_v14  ;;  %3435 = vmatmul.mubr.f32.vlgmr.msra.gmra.mxu0 %v4226_v16  ;;  %v1141_v30 = vsub.f32 %v1139_v14, %v1140_v29  ;;  %v1147_v31 = vand.u32 4294901760, %v1146_v17  ;;  %v1643_v44 = vsub.f32 %v989_v27, %v4234_v32  ;;  %v4241_v47 = vand.u32 4294901760, %v983_v33 }
 0x151   : > { %3445 = vmatpush3.msra.mxu0 %v1139_v14  ;;  %3448 = vmatprep.mubr.f32.mxu0 %v4166_v7  ;;  %v880_v57 = vadd.f32 %v879_v23, %v755_v41  ;;  %v1001_v58 = vadd.f32 %v3426_v40, %v886_v20  ;;  %v994_v59 = vpop.f32.mrf.mxu1  ;;  %v3413_v25 = vpop.f32.mrf.mxu0 }
 0x152   : > { %3446 = vmatprep.subr.mxu0 %v1146_v17  ;;  %v1142_v34 = vand.u32 4294901760, %v1141_v30  ;;  %v1148_v35 = vsub.f32 %v1146_v17, %v1147_v31  ;;  %v1650_v52 = vsub.f32 %v983_v33, %v4241_v47  ;;  %v1644_v53 = vand.u32 4294901760, %v1643_v44 }
 0x153   : > { %3447 = vmatpush3.msra.mxu0 %v1146_v17  ;;  %v4268_v61 = vand.u32 4294901760, %v1001_v58  ;;  %v995_v62 = vadd.f32 %v994_v59, %v880_v57  ;;  %v891_v9 = vpop.f32.mrf.mxu0  ;;  %v3429_v49 = vpop.f32.mrf.mxu1 }
 0x154   : > { %3458 = vmatprep.subr.mxu0 %v1140_v29  ;;  %3449 = vmatmul.mubr.f32.vlgmr.msra.gmra.mxu0 %v4203_v42  ;;  %v1149_v39 = vand.u32 4294901760, %v1148_v35  ;;  %v1645_v55 = vsub.f32 %v1643_v44, %v1644_v53  ;;  %v1651_v56 = vand.u32 4294901760, %v1650_v52 }
 0x155   : > { %3437 = vmatprep.subr.mxu1 %v1142_v34  ;;  %3459 = vmatpush3.msra.mxu0 %v1140_v29  ;;  %v2148_v2 = vsub.f32 %v1001_v58, %v4268_v61  ;;  %v4278_v5 = vand.u32 4294901760, %v995_v62 }
 0x156   : > { %3438 = vmatpush3.msra.mxu1 %v1142_v34  ;;  %3460 = vmatprep.subr.mxu0 %v1147_v31  ;;  %v1646_v46 = vand.u32 4294901760, %v1645_v55  ;;  %v1652_v60 = vsub.f32 %v1650_v52, %v1651_v56 }
 0x157   : > { %3439 = vmatprep.subr.mxu1 %v1149_v39  ;;  %3461 = vmatpush3.msra.mxu0 %v1147_v31  ;;  %v2155_v4 = vsub.f32 %v995_v62, %v4278_v5  ;;  %v2149_v24 = vand.u32 4294901760, %v2148_v2 }
 0x158   : > { %3440 = vmatpush3.msra.mxu1 %v1149_v39  ;;  %3462 = vmatprep.mubr.f32.mxu0 %v4163_v6  ;;  %v1653_v0 = vand.u32 4294901760, %v1652_v60 }
 0x159   : > { %3451 = vmatprep.subr.mxu1 %v4220_v3  ;;  %3472 = vmatprep.subr.mxu0 %v4234_v32  ;;  %v2150_v11 = vsub.f32 %v2148_v2, %v2149_v24  ;;  %v2156_v12 = vand.u32 4294901760, %v2155_v4 }
 0x15a   : > { %3442 = vmatmul.mubr.f32.vlgmr.msra.gmra.mxu1 %v4194_v36  ;;  %3463 = vmatmul.mubr.f32.vlgmr.msra.gmra.mxu0 %v4194_v36 }
 0x15b   : > { %3452 = vmatpush3.msra.mxu1 %v4220_v3  ;;  %3473 = vmatpush3.msra.mxu0 %v4234_v32  ;;  %v2157_v17 = vsub.f32 %v2155_v4, %v2156_v12 }
 0x15c   : > { %3453 = vmatprep.subr.mxu1 %v4223_v15  ;;  %3474 = vmatprep.subr.mxu0 %v4241_v47 }
 0x15d   : > { %3454 = vmatpush3.msra.mxu1 %v4223_v15  ;;  %3475 = vmatpush3.msra.mxu0 %v4241_v47  ;;  %v2158_v28 = vand.u32 4294901760, %v2157_v17 }
 0x15e   : > { %3455 = vmatprep.mubr.f32.mxu1 %v4170_v8  ;;  %3465 = vmatprep.subr.mxu1 %v4220_v3 }
 0x15f   : > { %3476 = vmatprep.mubr.f32.mxu0 %v4174_v10  ;;  %3486 = vmatprep.subr.mxu0 %v1643_v44 }
 0x160   : > { %3456 = vmatmul.mubr.f32.vlgmr.msra.gmra.mxu1 %v4214_v51  ;;  %3477 = vmatmul.mubr.f32.vlgmr.msra.gmra.mxu0 %v4226_v16 }
 0x161   : > { %3466 = vmatpush3.msra.mxu1 %v4220_v3  ;;  %3487 = vmatpush3.msra.mxu0 %v1643_v44  ;;  %v779_v3 = vadd.f32 %v4211_v50, %v648_v1  ;;  %v771_v50 = vadd.f32 %v4216_v54, %v641_v45  ;;  %v2151_v54 = vand.u32 4294901760, %v2150_v11 }
 0x162   : > { %3467 = vmatprep.subr.mxu1 %v4223_v15  ;;  %3488 = vmatprep.subr.mxu0 %v1650_v52 }
 0x163   : > { %3468 = vmatpush3.msra.mxu1 %v4223_v15  ;;  %3489 = vmatpush3.msra.mxu0 %v1650_v52  ;;  %v898_v26 = vadd.f32 %v3413_v25, %v779_v3  ;;  %v892_v13 = vadd.f32 %v891_v9, %v771_v50  ;;  %v1006_v15 = vpop.f32.mrf.mxu1 }
 0x164   : > { %3469 = vmatprep.mubr.f32.mxu1 %v4163_v6  ;;  %3479 = vmatprep.subr.mxu1 %v1646_v46 }
 0x165   : > { %3490 = vmatprep.mubr.f32.mxu0 %v4166_v7  ;;  %3500 = vmatprep.subr.mxu0 %v1644_v53  ;;  %v1013_v14 = vadd.f32 %v3429_v49, %v898_v26  ;;  %v1007_v27 = vadd.f32 %v1006_v15, %v892_v13 }
 0x166   : > { %3470 = vmatmul.mubr.f32.vlgmr.msra.gmra.mxu1 %v4194_v36  ;;  %3491 = vmatmul.mubr.f32.vlgmr.msra.gmra.mxu0 %v4203_v42 }
 0x167   : > { %3480 = vmatpush3.msra.mxu1 %v1646_v46  ;;  %3501 = vmatpush3.msra.mxu0 %v1644_v53  ;;  %v4306_v19 = vand.u32 4294901760, %v1013_v14  ;;  %v2568_v30 = vand.u32 4294901760, %v1007_v27 }
 0x168   : > { %3481 = vmatprep.subr.mxu1 %v1653_v0  ;;  %3502 = vmatprep.subr.mxu0 %v1651_v56 }
 0x169   : > { %3482 = vmatpush3.msra.mxu1 %v1653_v0  ;;  %3503 = vmatpush3.msra.mxu0 %v1651_v56  ;;  %v2653_v29 = vsub.f32 %v1013_v14, %v4306_v19  ;;  %v2660_v31 = vsub.f32 %v1007_v27, %v2568_v30 }
 0x16a   : > { %3483 = vmatprep.mubr.f32.mxu1 %v4163_v6  ;;  %3493 = vmatprep.subr.mxu1 %v4234_v32 }
 0x16b   : > { %3504 = vmatprep.mubr.f32.mxu0 %v4163_v6  ;;  %3514 = vmatprep.subr.mxu0 %v4268_v61  ;;  %v2661_v34 = vand.u32 4294901760, %v2660_v31 }
 0x16c   : > { %3484 = vmatmul.mubr.f32.vlgmr.msra.gmra.mxu1 %v4194_v36  ;;  %3505 = vmatmul.mubr.f32.vlgmr.msra.gmra.mxu0 %v4194_v36 }
 0x16d   : > { %3494 = vmatpush3.msra.mxu1 %v4234_v32  ;;  %3515 = vmatpush3.msra.mxu0 %v4268_v61  ;;  %v2662_v38 = vsub.f32 %v2660_v31, %v2661_v34 }
 0x16e   : > { %3495 = vmatprep.subr.mxu1 %v4241_v47  ;;  %3516 = vmatprep.subr.mxu0 %v4278_v5 }
 0x16f   : > { %3496 = vmatpush3.msra.mxu1 %v4241_v47  ;;  %3517 = vmatpush3.msra.mxu0 %v4278_v5 }
 0x170   : > { %3497 = vmatprep.mubr.f32.mxu1 %v4170_v8  ;;  %3507 = vmatprep.subr.mxu1 %v4234_v32 }
 0x171   : > { %3518 = vmatprep.mubr.f32.mxu0 %v4174_v10  ;;  %3528 = vmatprep.subr.mxu0 %v2148_v2 }
 0x172   : > { %3498 = vmatmul.mubr.f32.vlgmr.msra.gmra.mxu1 %v4214_v51  ;;  %3519 = vmatmul.mubr.f32.vlgmr.msra.gmra.mxu0 %v4226_v16 }
 0x173   : > { %3508 = vmatpush3.msra.mxu1 %v4234_v32  ;;  %3529 = vmatpush3.msra.mxu0 %v2148_v2  ;;  %v2654_v32 = vand.u32 4294901760, %v2653_v29 }
 0x174   : > { %3509 = vmatprep.subr.mxu1 %v4241_v47  ;;  %3530 = vmatprep.subr.mxu0 %v2155_v4 }
 0x175   : > { %3510 = vmatpush3.msra.mxu1 %v4241_v47  ;;  %3531 = vmatpush3.msra.mxu0 %v2155_v4  ;;  %v2655_v33 = vsub.f32 %v2653_v29, %v2654_v32 }
 0x176   : > { %3511 = vmatprep.mubr.f32.mxu1 %v4163_v6  ;;  %3521 = vmatprep.subr.mxu1 %v2151_v54 }
 0x177   : > { %3532 = vmatprep.mubr.f32.mxu0 %v4166_v7  ;;  %3542 = vmatprep.subr.mxu0 %v2149_v24  ;;  %v2656_v35 = vand.u32 4294901760, %v2655_v33 }
 0x178   : > { %3512 = vmatmul.mubr.f32.vlgmr.msra.gmra.mxu1 %v4194_v36  ;;  %3533 = vmatmul.mubr.f32.vlgmr.msra.gmra.mxu0 %v4203_v42 }
 0x179   : > { %3522 = vmatpush3.msra.mxu1 %v2151_v54  ;;  %3543 = vmatpush3.msra.mxu0 %v2149_v24 }
 0x17a   : > { %3523 = vmatprep.subr.mxu1 %v2158_v28  ;;  %3544 = vmatprep.subr.mxu0 %v2156_v12 }
 0x17b   : > { %3524 = vmatpush3.msra.mxu1 %v2158_v28  ;;  %3545 = vmatpush3.msra.mxu0 %v2156_v12 }
 0x17c   : > { %3525 = vmatprep.mubr.f32.mxu1 %v4163_v6  ;;  %3535 = vmatprep.subr.mxu1 %v4268_v61 }
 0x17d   : > { %3546 = vmatprep.mubr.f32.mxu0 %v4163_v6  ;;  %3556 = vmatprep.subr.mxu0 %v4306_v19 }
 0x17e   : > { %3526 = vmatmul.mubr.f32.vlgmr.msra.gmra.mxu1 %v4194_v36  ;;  %3547 = vmatmul.mubr.f32.vlgmr.msra.gmra.mxu0 %v4194_v36 }
 0x17f   : > { %3536 = vmatpush3.msra.mxu1 %v4268_v61  ;;  %3557 = vmatpush3.msra.mxu0 %v4306_v19 }
 0x180   : > { %3537 = vmatprep.subr.mxu1 %v4278_v5  ;;  %3558 = vmatprep.subr.mxu0 %v2568_v30 }
 0x181   : > { %3538 = vmatpush3.msra.mxu1 %v4278_v5  ;;  %3559 = vmatpush3.msra.mxu0 %v2568_v30 }
 0x182   : > { %3539 = vmatprep.mubr.f32.mxu1 %v4170_v8  ;;  %3549 = vmatprep.subr.mxu1 %v4268_v61 }
 0x183   : > { %3560 = vmatprep.mubr.f32.mxu0 %v4174_v10  ;;  %3570 = vmatprep.subr.mxu0 %v2653_v29  ;;  %v2663_v10 = vand.u32 4294901760, %v2662_v38 }
 0x184   : > { %3540 = vmatmul.mubr.f32.vlgmr.msra.gmra.mxu1 %v4214_v51  ;;  %3561 = vmatmul.mubr.f32.vlgmr.msra.gmra.mxu0 %v4226_v16 }
 0x185   : > { %3550 = vmatpush3.msra.mxu1 %v4268_v61  ;;  %3571 = vmatpush3.msra.mxu0 %v2653_v29 }
 0x186   : > { %3551 = vmatprep.subr.mxu1 %v4278_v5  ;;  %3572 = vmatprep.subr.mxu0 %v2660_v31 }
 0x187   : > { %3552 = vmatpush3.msra.mxu1 %v4278_v5  ;;  %3573 = vmatpush3.msra.mxu0 %v2660_v31 }
 0x188   : > { %3553 = vmatprep.mubr.f32.mxu1 %v4163_v6  ;;  %3563 = vmatprep.subr.mxu1 %v2656_v35 }
 0x189   : > { %3574 = vmatprep.mubr.f32.mxu0 %v4166_v7  ;;  %3584 = vmatprep.subr.mxu0 %v2654_v32 }
 0x18a   : > { %3554 = vmatmul.mubr.f32.vlgmr.msra.gmra.mxu1 %v4194_v36  ;;  %3575 = vmatmul.mubr.f32.vlgmr.msra.gmra.mxu0 %v4203_v42 }
 0x18b   : > { %3564 = vmatpush3.msra.mxu1 %v2656_v35  ;;  %3585 = vmatpush3.msra.mxu0 %v2654_v32 }
 0x18c   : > { %3565 = vmatprep.subr.mxu1 %v2663_v10  ;;  %3586 = vmatprep.subr.mxu0 %v2661_v34 }
 0x18d   : > { %3566 = vmatpush3.msra.mxu1 %v2663_v10  ;;  %3587 = vmatpush3.msra.mxu0 %v2661_v34 }
 0x18e   : > { %3567 = vmatprep.mubr.f32.mxu1 %v4163_v6  ;;  %3577 = vmatprep.subr.mxu1 %v4306_v19 }
 0x18f   : > { %3568 = vmatmul.mubr.f32.vlgmr.msra.gmra.mxu1 %v4194_v36  ;;  %3588 = vmatprep.mubr.f32.mxu0 %v4163_v6 }
 0x190   : > { %3578 = vmatpush3.msra.mxu1 %v4306_v19  ;;  %3581 = vmatprep.mubr.f32.mxu1 %v4170_v8 }
 0x191   : > { %3579 = vmatprep.subr.mxu1 %v2568_v30  ;;  %3589 = vmatmul.mubr.f32.vlgmr.msra.gmra.mxu0 %v4194_v36 }
 0x192   : > { %3580 = vmatpush3.msra.mxu1 %v2568_v30 }
 0x193   : > { %3591 = vmatprep.subr.mxu1 %v4306_v19  ;;  %3582 = vmatmul.mubr.f32.vlgmr.msra.gmra.mxu1 %v4214_v51 }
 0x194   : > { %3592 = vmatpush3.msra.mxu1 %v4306_v19  ;;  %3595 = vmatprep.mubr.f32.mxu1 %v4163_v6 }
 0x195   : > { %3593 = vmatprep.subr.mxu1 %v2568_v30 }
 0x196   : > { %3594 = vmatpush3.msra.mxu1 %v2568_v30 }
 0x197   : > { %3596 = vmatmul.mubr.f32.vlgmr.msra.gmra.mxu1 %v4194_v36 }
 0x210   : > { %v3436_v7 = vpop.f32.mrf.mxu0 }
 0x212   : > { %v1095_v42 = vpop.f32.mrf.mxu0 }
 0x214   : > { %v3450_v16 = vpop.f32.mrf.mxu0 }
 0x216   : > { %v1268_v8 = vpop.f32.mrf.mxu0 }
 0x21a   : > { %v3443_v39 = vpop.f32.mrf.mxu1  ;;  %v3464_v43 = vpop.f32.mrf.mxu0 }
 0x21b   : > { %v1193_v44 = vadd.f32 %v3443_v39, %v3436_v7 }
 0x21c   : > { %v1186_v47 = vpop.f32.mrf.mxu1  ;;  %v1435_v48 = vpop.f32.mrf.mxu0 }
 0x21d   : > { %v1187_v18 = vadd.f32 %v1186_v47, %v1095_v42  ;;  %v1276_v51 = vadd.f32 %v3450_v16, %v1193_v44 }
 0x21f   : > { %v1269_v21 = vadd.f32 %v1268_v8, %v1187_v18 }
 0x220   : > { %v3457_v37 = vpop.f32.mrf.mxu1  ;;  %v3478_v52 = vpop.f32.mrf.mxu0 }
 0x221   : > { %v1359_v6 = vadd.f32 %v3457_v37, %v1276_v51 }
 0x222   : > { %v1350_v53 = vpop.f32.mrf.mxu1  ;;  %v1599_v20 = vpop.f32.mrf.mxu0 }
 0x223   : > { %v1351_v23 = vadd.f32 %v1350_v53, %v1269_v21  ;;  %v1442_v36 = vadd.f32 %v3464_v43, %v1359_v6 }
 0x225   : > { %v1436_v40 = vadd.f32 %v1435_v48, %v1351_v23 }
 0x226   : > { %v3471_v41 = vpop.f32.mrf.mxu1  ;;  %v3492_v55 = vpop.f32.mrf.mxu0 }
 0x227   : > { %v1521_v56 = vadd.f32 %v3471_v41, %v1442_v36 }
 0x228   : > { %v1514_v57 = vpop.f32.mrf.mxu1  ;;  %v1772_v58 = vpop.f32.mrf.mxu0 }
 0x229   : > { %1525 = vst.msk [vmem:[%s4348_s23 + $0x8] sm:$0xff] %vm231_vm0, %v1521_v56  ;;  %v1515_v59 = vadd.f32 %v1514_v57, %v1436_v40 }
 0x22b   : > { %1524 = vst.msk [vmem:[%s4348_s23] sm:$0xff] %vm231_vm0, %v1515_v59 }
 0x22c   : > { %v3485_v46 = vpop.f32.mrf.mxu1  ;;  %v3506_v60 = vpop.f32.mrf.mxu0 }
 0x22d   : > { %v1697_v61 = vadd.f32 %v3485_v46, %v3478_v52 }
 0x22e   : > { %v1690_v62 = vpop.f32.mrf.mxu1  ;;  %v1939_v63 = vpop.f32.mrf.mxu0 }
 0x22f   : > { %v1691_v0 = vadd.f32 %v1690_v62, %v1599_v20  ;;  %v1780_v1 = vadd.f32 %v3492_v55, %v1697_v61 }
 0x231   : > { %v1773_v2 = vadd.f32 %v1772_v58, %v1691_v0 }
 0x232   : > { %v3499_v5 = vpop.f32.mrf.mxu1  ;;  %v3520_v22 = vpop.f32.mrf.mxu0 }
 0x233   : > { %v1863_v25 = vadd.f32 %v3499_v5, %v1780_v1 }
 0x234   : > { %v1854_v45 = vpop.f32.mrf.mxu1  ;;  %v2104_v3 = vpop.f32.mrf.mxu0 }
 0x235   : > { %v1855_v4 = vadd.f32 %v1854_v45, %v1773_v2  ;;  %v1946_v24 = vadd.f32 %v3506_v60, %v1863_v25 }
 0x237   : > { %v1940_v26 = vadd.f32 %v1939_v63, %v1855_v4 }
 0x238   : > { %v3513_v9 = vpop.f32.mrf.mxu1  ;;  %v3534_v49 = vpop.f32.mrf.mxu0 }
 0x239   : > { %v2025_v50 = vadd.f32 %v3513_v9, %v1946_v24 }
 0x23a   : > { %v2018_v11 = vpop.f32.mrf.mxu1  ;;  %v2277_v12 = vpop.f32.mrf.mxu0 }
 0x23b   : > { %3163 = vst.msk [vmem:[%s4348_s23 + $0x18] sm:$0xff] %vm231_vm0, %v2025_v50  ;;  %v2019_v13 = vadd.f32 %v2018_v11, %v1940_v26 }
 0x23d   : > { %3162 = vst.msk [vmem:[%s4348_s23 + $0x10] sm:$0xff] %vm231_vm0, %v2019_v13 }
 0x23e   : > { %v3527_v14 = vpop.f32.mrf.mxu1  ;;  %v3548_v15 = vpop.f32.mrf.mxu0 }
 0x23f   : > { %v2202_v54 = vadd.f32 %v3527_v14, %v3520_v22 }
 0x240   : > { %v2195_v17 = vpop.f32.mrf.mxu1  ;;  %v2444_v19 = vpop.f32.mrf.mxu0 }
 0x241   : > { %v2196_v27 = vadd.f32 %v2195_v17, %v2104_v3  ;;  %v2285_v28 = vadd.f32 %v3534_v49, %v2202_v54 }
 0x243   : > { %v2278_v29 = vadd.f32 %v2277_v12, %v2196_v27 }
 0x244   : > { %v3541_v30 = vpop.f32.mrf.mxu1  ;;  %v3562_v31 = vpop.f32.mrf.mxu0 }
 0x245   : > { %v2368_v32 = vadd.f32 %v3541_v30, %v2285_v28 }
 0x246   : > { %v2359_v33 = vpop.f32.mrf.mxu1  ;;  %v2609_v38 = vpop.f32.mrf.mxu0 }
 0x247   : > { %v2360_v34 = vadd.f32 %v2359_v33, %v2278_v29  ;;  %v2451_v35 = vadd.f32 %v3548_v15, %v2368_v32 }
 0x249   : > { %v2445_v10 = vadd.f32 %v2444_v19, %v2360_v34 }
 0x24a   : > { %v3555_v7 = vpop.f32.mrf.mxu1  ;;  %v3576_v16 = vpop.f32.mrf.mxu0 }
 0x24b   : > { %v2530_v42 = vadd.f32 %v3555_v7, %v2451_v35 }
 0x24c   : > { %v2523_v8 = vpop.f32.mrf.mxu1  ;;  %v2782_v44 = vpop.f32.mrf.mxu0 }
 0x24d   : > { %3165 = vst.msk [vmem:[%s4348_s23 + $0x28] sm:$0xff] %vm231_vm0, %v2530_v42  ;;  %v2524_v39 = vadd.f32 %v2523_v8, %v2445_v10 }
 0x24f   : > { %3164 = vst.msk [vmem:[%s4348_s23 + $0x20] sm:$0xff] %vm231_vm0, %v2524_v39  ;;  %v3569_v43 = vpop.f32.mrf.mxu1 }
 0x250   : > { %v2707_v47 = vadd.f32 %v3569_v43, %v3562_v31 }
 0x251   : > { %v2700_v48 = vpop.f32.mrf.mxu1  ;;  %v3590_v37 = vpop.f32.mrf.mxu0 }
 0x252   : > { %v2701_v18 = vadd.f32 %v2700_v48, %v2609_v38  ;;  %v2790_v51 = vadd.f32 %v3576_v16, %v2707_v47 }
 0x253   : > { %v3583_v21 = vpop.f32.mrf.mxu1  ;;  %v2949_v36 = vpop.f32.mrf.mxu0 }
 0x254   : > { %v2783_v52 = vadd.f32 %v2782_v44, %v2701_v18  ;;  %v2873_v6 = vadd.f32 %v3583_v21, %v2790_v51 }
 0x255   : > { %v2864_v53 = vpop.f32.mrf.mxu1 }
 0x256   : > { %v2865_v20 = vadd.f32 %v2864_v53, %v2783_v52  ;;  %v2956_v23 = vadd.f32 %v3590_v37, %v2873_v6 }
 0x257   : > { %v3597_v40 = vpop.f32.mrf.mxu1 }
 0x258   : > { %v2950_v41 = vadd.f32 %v2949_v36, %v2865_v20  ;;  %v3035_v55 = vadd.f32 %v3597_v40, %v2956_v23 }
 0x259   : > { %v3028_v56 = vpop.f32.mrf.mxu1 }
 0x25a   : > { %3167 = vst.msk [vmem:[%s4348_s23 + $0x38] sm:$0xff] %vm231_vm0, %v3035_v55  ;;  %v3029_v57 = vadd.f32 %v3028_v56, %v2950_v41 }
 0x25c   : > { %3166 = vst.msk [vmem:[%s4348_s23 + $0x30] sm:$0xff] %vm231_vm0, %v3029_v57 }
 0x25d   : > { %3762 = shalt.err (!%p3759_p0)
}
 0x25e   : > { %s3763_s27 = scalar_lea.hbm %s4367_s19, 1024  ;;  %s3767_s6 = scalar_lea.hbm %s4421_s3, 2048 }
 0x25f   : > { %p3764_p2 = scmp.ne.s32.totalorder %s4367_s19, %s3763_s27  ;;  %p3768_p6 = scmp.lt.s32.totalorder %s4367_s19, %s4421_s3 }
 0x260   : > { %p3769_p13 = scmp.lt.s32.totalorder %s3767_s6, %s3763_s27 }
 0x261   : > { %p3765_p3 = pnand %p3764_p2, %p4439_p11 }
 0x262   : > { %p3770_p8 = por %p3769_p13, %p3768_p6 }
 0x263   : > { %p3766_p7 = pneg %p3765_p3 }
 0x265   : > { %p3771_p4 = pnand %p3770_p8, %p3766_p7 }
 0x267   : > { %3774 = shalt.err (!%p3771_p4)
}
 0x268   : > { %s3829_s10 = smov 128   ;;  %s3830_s8 = smov 8  }
 0x269   : > { %3608 = dma.vmem_to_hbm [thread:$0]  (%p4439_p11), %s4369_s11, 1024, %s4367_s19, %s4377_s16, %s3829_s10, %s3829_s10, %s3830_s8  }
 0x26a PF: > { %s3071_s23 = sand.u32 1, %s3809_s12   ;;  %p4440_p12 = scmp.ne.s32.totalorder %s4429_s25, 0 }
 0x26b   : > { %p4441_p9 = scmp.ge.s32.totalorder %s3821_s15, 2  ;;  %s3072_s9 = scalar_lea.sflag [#allocation4], %s3071_s23 }
 0x26d   : > { %p3622_p10 = pnand %p4441_p9, %p4440_p12 }
 0x26f   : > { %p3623_p1 = pneg %p3622_p10 }
 0x271   : > { %3804 = dma.done.wait (%p3623_p1), %s3072_s9, 1024  }
 0x272   : > { %3806 = vsyncadd (%p3623_p1), %s3072_s9, 4294966272  ;;  %p15_p5 = scmp.ge.s32.totalorder %s3876_s18, 4   ;;  %s4442_s12 = smov %s3813_s13 }
 0x273   : > { %s4443_s13 = smov %s3817_s14  ;;  %s4444_s14 = smov %s3888_s21 }
 0x274   : > { %s4445_s15 = smov %s3876_s18  ;;  %17 = sbr.rel (!%p15_p5) target bundleno = 5 (0x5), region = 87 }
 0x279   :  { %3077 = vsyncpa [#allocation3], 1 }
 0x27a   :  { %3079 = vsyncpa [#allocation3 + $0x1], 1 }
 0x27b   :  { %3080 = vsyncpa [#allocation6], 1 }
 0x27c   :  { %3081 = vsyncpa [#allocation4], 1 }
 0x27d   :  { %3083 = vsyncpa [#allocation4 + $0x1], 1 }

</bundles_post_ra>
